<compile_context>
chip_gen: v7x
topology: tpu7x:2x2x1
jax: 0.10.0
libtpu: 0.0.40
codegen_flags: <defaults>
</compile_context>

<pallas_src>
import functools

import jax
import jax.numpy as jnp
import numpy as np
from jax.experimental import pallas as pl
from jax.experimental.pallas import tpu as pltpu

LANE = 128


def _round_up(x, m):
    return (x + m - 1) // m * m


# --------------------------------- kernel -----------------------------------

def unet_kernel(x_ref, w_ref, b_ref, o_ref):
    nb, L, cin = x_ref.shape          # block: (batch_in_block, L, Cin_real)
    P = w_ref.shape[-1]               # lane-padded channel width (multiple of 128)
    M = nb * L

    # Pad the real channels up to the lane width INSIDE the kernel so every
    # intermediate / matmul is lane-dense; HBM I/O stays at the real Cin.
    x3 = x_ref[...]                                            # (nb, L, cin) f32
    if cin < P:
        x3 = jnp.concatenate(
            [x3, jnp.zeros((nb, L, P - cin), jnp.float32)], axis=-1)
    x = x3.reshape(M, P)                                       # (M, P) f32

    # Per-sequence boundary masks, computed once and reused by all 4 layers.
    pos = jax.lax.broadcasted_iota(jnp.int32, (M, 1), 0) % L
    not_first = pos >= 1              # row l-1 exists within this sequence
    not_last = pos < (L - 1)          # row l+1 exists within this sequence

    def conv1d(h, layer):
        # Conv1d(kernel=3, padding=1): all 3 taps as ONE matmul.
        # Rolls/masks in f32 (v5e-safe); cast the three (M, P) pieces to bf16
        # right before the concat so the (M, 3P) temporary is bf16 only.
        h_prev = jnp.where(not_first, pltpu.roll(h, shift=1, axis=0), 0.0)
        h_next = jnp.where(not_last, pltpu.roll(h, shift=M - 1, axis=0), 0.0)
        hs = jnp.concatenate(
            [h_prev.astype(jnp.bfloat16),
             h.astype(jnp.bfloat16),
             h_next.astype(jnp.bfloat16)], axis=-1)            # (M, 3P) bf16
        y = jnp.dot(hs, w_ref[layer],                          # bf16 MXU
                    preferred_element_type=jnp.float32)        # f32 accum
        return y + b_ref[layer]                                # (1, P) f32 bias

    h = jax.nn.relu(conv1d(x, 0))     # encoder conv1 + ReLU
    h = jax.nn.relu(conv1d(h, 1))     # encoder conv2 + ReLU
    h = jax.nn.relu(conv1d(h, 2))     # decoder conv1 + ReLU
    y = conv1d(h, 3)                  # decoder conv2 (no ReLU)

    # Store only the real channels (tiny masked store; avoids a wrapper slice
    # and 32x padded output traffic to HBM).
    o_ref[...] = y.reshape(nb, L, P)[:, :, :cin]


# ------------------------------- param prep ---------------------------------

def _fuse_and_pad_params(params, input_dim, num_features):
    """Zero-pad every layer's channels to one common lane width P, fuse the 3
    taps into a (3P, P) matmul weight, and stack the 4 layers into a single
    (4, 3P, P) bf16 weight array + (4, 1, P) f32 bias array (2 DMAs total)."""
    P = _round_up(max(input_dim, num_features), LANE)

    def fuse_w(w_kio):
        k, cin, cout = w_kio.shape
        wp = jnp.zeros((k, P, P), jnp.float32).at[:, :cin, :cout].set(w_kio)
        return wp.reshape(k * P, P)

    def pad_b(b):
        return jnp.zeros((1, P), jnp.float32).at[:, : b.shape[-1]].set(b)

    W = jnp.stack([fuse_w(params["w1"]), fuse_w(params["w2"]),
                   fuse_w(params["w3"]), fuse_w(params["w4"])]
                  ).astype(jnp.bfloat16)                       # (4, 3P, P) bf16
    B = jnp.stack([pad_b(params["b1"]), pad_b(params["b2"]),
                   pad_b(params["b3"]), pad_b(params["b4"])])  # (4, 1, P) f32
    return W, B, P


# --------------------------------- wrapper -----------------------------------

@functools.partial(jax.jit, static_argnames=("batch_blocks",))
def simple_unet_pallas(x_ncw, params, *, batch_blocks=1):
    """x_ncw: (N, Cin, L) f32 — same layout as the PyTorch module. Returns NCW.

    batch_blocks=1 keeps the whole batch in one grid step (right choice at
    small sizes on every chip). Only raise it — i.e. tile M = N*L across grid
    steps / TensorCores — when each block would still carry >= ~512 rows.
    """
    N, input_dim, L = x_ncw.shape
    num_features = params["w1"].shape[-1]
    assert N % batch_blocks == 0
    nb = N // batch_blocks

    W, B, P = _fuse_and_pad_params(params, input_dim, num_features)
    x_nlc = jnp.transpose(x_ncw, (0, 2, 1))   # NCW -> NLC (channels on lanes)

    # Real (unpadded) cost hint so XLA schedules the surrounding ops sensibly.
    flops = 2 * N * L * 3 * (input_dim * num_features
                             + 2 * num_features * num_features
                             + num_features * input_dim)
    real_param_bytes = sum(int(np.prod(params[k].shape)) for k in params) * 4
    bytes_accessed = 2 * N * L * input_dim * 4 + real_param_bytes
    cost = pl.CostEstimate(flops=flops, transcendentals=0,
                           bytes_accessed=bytes_accessed)

    # Per-block VMEM accounting: double-buffered real I/O blocks, the
    # single-buffered resident params, ~10 live (M, P) f32 temps and the
    # bf16 (M, 3P) concat per layer.  Generous headroom, capped at 32 MiB so
    # it stays safe on v7x (64 MiB physical) and above v5e's 16 MiB default.
    M = nb * L
    vmem_est = (2 * 2 * nb * L * input_dim * 4
                + W.size * 2 + B.size * 4
                + 10 * M * P * 4 + 2 * M * 3 * P * 2)
    vmem_limit = int(min(max(4 * vmem_est, 16 * 2 ** 20), 32 * 2 ** 20))

    out_nlc = pl.pallas_call(
        unet_kernel,
        out_shape=jax.ShapeDtypeStruct((N, L, input_dim), jnp.float32),
        grid_spec=pltpu.PrefetchScalarGridSpec(
            num_scalar_prefetch=0,
            grid=(batch_blocks,),
            in_specs=[
                pl.BlockSpec((nb, L, input_dim), lambda i: (i, 0, 0)),
                # Constant index_map -> nothing to prefetch-overlap: single
                # buffer the resident weights/biases (halves their VMEM).
                pl.BlockSpec(W.shape, lambda i: (0, 0, 0),
                             pipeline_mode=pl.Buffered(1)),
                pl.BlockSpec(B.shape, lambda i: (0, 0, 0),
                             pipeline_mode=pl.Buffered(1)),
            ],
            out_specs=pl.BlockSpec((nb, L, input_dim), lambda i: (i, 0, 0)),
        ),
        compiler_params=pltpu.CompilerParams(
            dimension_semantics=("parallel",),
            vmem_limit_bytes=vmem_limit,
        ),
        cost_estimate=cost,
    )(x_nlc, W, B)
    return jnp.transpose(out_nlc, (0, 2, 1))   # NLC -> NCW (PyTorch layout)


# ---------------------------- pure-JAX reference ----------------------------

def conv1d_ref(x_nlc, w_kio, b):
    """Conv1d(k=3, pad=1) in NLC layout, f32."""
    N, L, _ = x_nlc.shape
    xp = jnp.pad(x_nlc, ((0, 0), (1, 1), (0, 0)))
    y = sum(jnp.einsum("nlc,cf->nlf", xp[:, k:k + L, :], w_kio[k]) for k in range(3))
    return y + b


def unet_ref(x_nlc, p):
    h = jax.nn.relu(conv1d_ref(x_nlc, p["w1"], p["b1"]))
    h = jax.nn.relu(conv1d_ref(h, p["w2"], p["b2"]))
    h = jax.nn.relu(conv1d_ref(h, p["w3"], p["b3"]))
    return conv1d_ref(h, p["w4"], p["b4"])


def init_params(key, input_dim, num_features):
    """Deterministic init. Weights (k=3, C_in, C_out); biases (1, C_out)."""
    shapes = {
        "w1": (3, input_dim, num_features),
        "w2": (3, num_features, num_features),
        "w3": (3, num_features, num_features),
        "w4": (3, num_features, input_dim),
    }
    params = {}
    for i, (name, shp) in enumerate(shapes.items()):
        k_w, k_b = jax.random.split(jax.random.fold_in(key, i))
        fan_in = shp[0] * shp[1]  # k * C_in (PyTorch Conv1d default bound)
        bound = 1.0 / np.sqrt(fan_in)
        params[name] = jax.random.uniform(k_w, shp, jnp.float32, -bound, bound)
        params[name.replace("w", "b")] = jax.random.uniform(
            k_b, (1, shp[-1]), jnp.float32, -bound, bound
        )
    return params


if __name__ == "__main__":
    key = jax.random.PRNGKey(0)
    batch, input_dim, num_features, seq = 2, 4, 32, 16

    # PyTorch forward takes NCW; the wrapper accepts the same layout.
    x_ncw = jax.random.normal(jax.random.fold_in(key, 100),
                              (batch, input_dim, seq), jnp.float32)
    params = init_params(key, input_dim, num_features)

    out_ncw = simple_unet_pallas(x_ncw, params, batch_blocks=1)
    out_ncw = jax.block_until_ready(out_ncw)
    assert out_ncw.shape == (batch, input_dim, seq)

    ref_ncw = jnp.transpose(unet_ref(jnp.transpose(x_ncw, (0, 2, 1)), params),
                            (0, 2, 1))
    # bf16 matmul operands (f32 accumulation) -> loosened tolerance vs f32 ref.
    np.testing.assert_allclose(np.asarray(out_ncw), np.asarray(ref_ncw),
                               rtol=2e-2, atol=2e-2)
    print("KERNEL_OK")
</pallas_src>

<mosaic_0001>
module attributes {stable_mosaic.version = 11 : i64} {
  func.func @unet_kernel(%arg0: i32, %arg1: memref<2x16x4xf32, #tpu.memory_space<vmem>>, %arg2: memref<4x384x128xbf16, #tpu.memory_space<vmem>>, %arg3: memref<4x1x128xf32, #tpu.memory_space<vmem>>, %arg4: memref<2x16x4xf32, #tpu.memory_space<vmem>>) attributes {dimension_semantics = [#tpu.dimension_semantics<parallel>], iteration_bounds = array<i64: 1>, scalar_prefetch = 0 : i64, scratch_operands = 0 : i64, tpu.core_type = #tpu.core_type<tc>, window_params = [{transform_indices = @transform_0, window_bounds = array<i64: 2, 16, 4>}, {pipeline_mode = #tpu.pipeline_mode<synchronous>, transform_indices = @transform_1, window_bounds = array<i64: 4, 384, 128>}, {pipeline_mode = #tpu.pipeline_mode<synchronous>, transform_indices = @transform_2, window_bounds = array<i64: 4, 1, 128>}, {transform_indices = @transform_3, window_bounds = array<i64: 2, 16, 4>}]} {
    %c0 = arith.constant 0 : index
    %c0_0 = arith.constant 0 : index
    %c0_1 = arith.constant 0 : index
    %0 = vector.load %arg1[%c0, %c0_0, %c0_1] : memref<2x16x4xf32, #tpu.memory_space<vmem>>, vector<2x16x4xf32>
    %cst = arith.constant 0.000000e+00 : f32
    %1 = vector.broadcast %cst : f32 to vector<2x16x124xf32>
    %2 = tpu.concatenate %0, %1 in 2 : vector<2x16x4xf32>, vector<2x16x124xf32> -> vector<2x16x128xf32>
    %3 = vector.shape_cast %2 : vector<2x16x128xf32> to vector<32x128xf32>
    %4 = tpu.iota {dimensions = array<i32: 0>} : vector<32x1xi32>
    %c16_i32 = arith.constant 16 : i32
    %c0_i32 = arith.constant 0 : i32
    %5 = arith.cmpi eq, %c16_i32, %c0_i32 : i32
    %c1_i32 = arith.constant 1 : i32
    %6 = arith.select %5, %c1_i32, %c16_i32 : i32
    %7 = vector.broadcast %6 : i32 to vector<32x1xi32>
    %8 = arith.remsi %4, %7 : vector<32x1xi32>
    %c0_i32_2 = arith.constant 0 : i32
    %9 = vector.broadcast %c0_i32_2 : i32 to vector<32x1xi32>
    %10 = arith.cmpi ne, %8, %9 : vector<32x1xi32>
    %c0_i32_3 = arith.constant 0 : i32
    %11 = vector.broadcast %c0_i32_3 : i32 to vector<32x1xi32>
    %12 = arith.cmpi slt, %8, %11 : vector<32x1xi32>
    %c0_i32_4 = arith.constant 0 : i32
    %13 = arith.cmpi slt, %6, %c0_i32_4 : i32
    %14 = vector.broadcast %13 : i1 to vector<32x1xi1>
    %15 = vector.broadcast %14 : vector<32x1xi1> to vector<32x1xi1>
    %16 = arith.xori %12, %15 : vector<32x1xi1>
    %17 = arith.andi %16, %10 : vector<32x1xi1>
    %18 = vector.broadcast %6 : i32 to vector<32x1xi32>
    %19 = arith.addi %8, %18 : vector<32x1xi32>
    %20 = arith.select %17, %19, %8 : vector<32x1xi1>, vector<32x1xi32>
    %c1_i32_5 = arith.constant 1 : i32
    %21 = vector.broadcast %c1_i32_5 : i32 to vector<32x1xi32>
    %22 = arith.cmpi sge, %20, %21 : vector<32x1xi32>
    %c15_i32 = arith.constant 15 : i32
    %23 = vector.broadcast %c15_i32 : i32 to vector<32x1xi32>
    %24 = arith.cmpi slt, %20, %23 : vector<32x1xi32>
    %c1_i32_6 = arith.constant 1 : i32
    %25 = tpu.dynamic_rotate %3 by %c1_i32_6 dim 0 : vector<32x128xf32>, i32 -> vector<32x128xf32>
    %cst_7 = arith.constant 0.000000e+00 : f32
    %26 = vector.shape_cast %22 : vector<32x1xi1> to vector<32x1xi1>
    %27 = vector.broadcast %26 : vector<32x1xi1> to vector<32x128xi1>
    %28 = vector.broadcast %cst_7 : f32 to vector<32x128xf32>
    %29 = arith.select %27, %25, %28 : vector<32x128xi1>, vector<32x128xf32>
    %c31_i32 = arith.constant 31 : i32
    %30 = tpu.dynamic_rotate %3 by %c31_i32 dim 0 : vector<32x128xf32>, i32 -> vector<32x128xf32>
    %cst_8 = arith.constant 0.000000e+00 : f32
    %31 = vector.shape_cast %24 : vector<32x1xi1> to vector<32x1xi1>
    %32 = vector.broadcast %31 : vector<32x1xi1> to vector<32x128xi1>
    %33 = vector.broadcast %cst_8 : f32 to vector<32x128xf32>
    %34 = arith.select %32, %30, %33 : vector<32x128xi1>, vector<32x128xf32>
    %35 = arith.truncf %29 : vector<32x128xf32> to vector<32x128xbf16>
    %36 = arith.truncf %3 : vector<32x128xf32> to vector<32x128xbf16>
    %37 = arith.truncf %34 : vector<32x128xf32> to vector<32x128xbf16>
    %38 = tpu.concatenate %35, %36, %37 in 1 : vector<32x128xbf16>, vector<32x128xbf16>, vector<32x128xbf16> -> vector<32x384xbf16>
    %c0_9 = arith.constant 0 : index
    %c0_10 = arith.constant 0 : index
    %c0_11 = arith.constant 0 : index
    %39 = vector.load %arg2[%c0_9, %c0_10, %c0_11] : memref<4x384x128xbf16, #tpu.memory_space<vmem>>, vector<1x384x128xbf16>
    %40 = vector.shape_cast %39 : vector<1x384x128xbf16> to vector<384x128xbf16>
    %cst_12 = arith.constant dense<0.000000e+00> : vector<32x128xf32>
    %41 = tpu.matmul %38, %40, %cst_12 {dimension_numbers = #tpu.dot_dimension_numbers<[1], [0], [0], [1], [0, 0, 1, 1], [], []>} : vector<32x384xbf16>, vector<384x128xbf16>, vector<32x128xf32> -> vector<32x128xf32>
    %c0_13 = arith.constant 0 : index
    %c0_14 = arith.constant 0 : index
    %c0_15 = arith.constant 0 : index
    %42 = vector.load %arg3[%c0_13, %c0_14, %c0_15] : memref<4x1x128xf32, #tpu.memory_space<vmem>>, vector<1x1x128xf32>
    %43 = vector.shape_cast %42 : vector<1x1x128xf32> to vector<1x128xf32>
    %44 = vector.broadcast %43 : vector<1x128xf32> to vector<32x128xf32>
    %45 = arith.addf %41, %44 : vector<32x128xf32>
    %cst_16 = arith.constant 0.000000e+00 : f32
    %46 = vector.broadcast %cst_16 : f32 to vector<32x128xf32>
    %47 = arith.maximumf %45, %46 : vector<32x128xf32>
    %c1_i32_17 = arith.constant 1 : i32
    %48 = tpu.dynamic_rotate %47 by %c1_i32_17 dim 0 : vector<32x128xf32>, i32 -> vector<32x128xf32>
    %cst_18 = arith.constant 0.000000e+00 : f32
    %49 = vector.shape_cast %22 : vector<32x1xi1> to vector<32x1xi1>
    %50 = vector.broadcast %49 : vector<32x1xi1> to vector<32x128xi1>
    %51 = vector.broadcast %cst_18 : f32 to vector<32x128xf32>
    %52 = arith.select %50, %48, %51 : vector<32x128xi1>, vector<32x128xf32>
    %c31_i32_19 = arith.constant 31 : i32
    %53 = tpu.dynamic_rotate %47 by %c31_i32_19 dim 0 : vector<32x128xf32>, i32 -> vector<32x128xf32>
    %cst_20 = arith.constant 0.000000e+00 : f32
    %54 = vector.shape_cast %24 : vector<32x1xi1> to vector<32x1xi1>
    %55 = vector.broadcast %54 : vector<32x1xi1> to vector<32x128xi1>
    %56 = vector.broadcast %cst_20 : f32 to vector<32x128xf32>
    %57 = arith.select %55, %53, %56 : vector<32x128xi1>, vector<32x128xf32>
    %58 = arith.truncf %52 : vector<32x128xf32> to vector<32x128xbf16>
    %59 = arith.truncf %47 : vector<32x128xf32> to vector<32x128xbf16>
    %60 = arith.truncf %57 : vector<32x128xf32> to vector<32x128xbf16>
    %61 = tpu.concatenate %58, %59, %60 in 1 : vector<32x128xbf16>, vector<32x128xbf16>, vector<32x128xbf16> -> vector<32x384xbf16>
    %c1 = arith.constant 1 : index
    %c0_21 = arith.constant 0 : index
    %c0_22 = arith.constant 0 : index
    %62 = vector.load %arg2[%c1, %c0_21, %c0_22] : memref<4x384x128xbf16, #tpu.memory_space<vmem>>, vector<1x384x128xbf16>
    %63 = vector.shape_cast %62 : vector<1x384x128xbf16> to vector<384x128xbf16>
    %cst_23 = arith.constant dense<0.000000e+00> : vector<32x128xf32>
    %64 = tpu.matmul %61, %63, %cst_23 {dimension_numbers = #tpu.dot_dimension_numbers<[1], [0], [0], [1], [0, 0, 1, 1], [], []>} : vector<32x384xbf16>, vector<384x128xbf16>, vector<32x128xf32> -> vector<32x128xf32>
    %c1_24 = arith.constant 1 : index
    %c0_25 = arith.constant 0 : index
    %c0_26 = arith.constant 0 : index
    %65 = vector.load %arg3[%c1_24, %c0_25, %c0_26] : memref<4x1x128xf32, #tpu.memory_space<vmem>>, vector<1x1x128xf32>
    %66 = vector.shape_cast %65 : vector<1x1x128xf32> to vector<1x128xf32>
    %67 = vector.broadcast %66 : vector<1x128xf32> to vector<32x128xf32>
    %68 = arith.addf %64, %67 : vector<32x128xf32>
    %cst_27 = arith.constant 0.000000e+00 : f32
    %69 = vector.broadcast %cst_27 : f32 to vector<32x128xf32>
    %70 = arith.maximumf %68, %69 : vector<32x128xf32>
    %c1_i32_28 = arith.constant 1 : i32
    %71 = tpu.dynamic_rotate %70 by %c1_i32_28 dim 0 : vector<32x128xf32>, i32 -> vector<32x128xf32>
    %cst_29 = arith.constant 0.000000e+00 : f32
    %72 = vector.shape_cast %22 : vector<32x1xi1> to vector<32x1xi1>
    %73 = vector.broadcast %72 : vector<32x1xi1> to vector<32x128xi1>
    %74 = vector.broadcast %cst_29 : f32 to vector<32x128xf32>
    %75 = arith.select %73, %71, %74 : vector<32x128xi1>, vector<32x128xf32>
    %c31_i32_30 = arith.constant 31 : i32
    %76 = tpu.dynamic_rotate %70 by %c31_i32_30 dim 0 : vector<32x128xf32>, i32 -> vector<32x128xf32>
    %cst_31 = arith.constant 0.000000e+00 : f32
    %77 = vector.shape_cast %24 : vector<32x1xi1> to vector<32x1xi1>
    %78 = vector.broadcast %77 : vector<32x1xi1> to vector<32x128xi1>
    %79 = vector.broadcast %cst_31 : f32 to vector<32x128xf32>
    %80 = arith.select %78, %76, %79 : vector<32x128xi1>, vector<32x128xf32>
    %81 = arith.truncf %75 : vector<32x128xf32> to vector<32x128xbf16>
    %82 = arith.truncf %70 : vector<32x128xf32> to vector<32x128xbf16>
    %83 = arith.truncf %80 : vector<32x128xf32> to vector<32x128xbf16>
    %84 = tpu.concatenate %81, %82, %83 in 1 : vector<32x128xbf16>, vector<32x128xbf16>, vector<32x128xbf16> -> vector<32x384xbf16>
    %c2 = arith.constant 2 : index
    %c0_32 = arith.constant 0 : index
    %c0_33 = arith.constant 0 : index
    %85 = vector.load %arg2[%c2, %c0_32, %c0_33] : memref<4x384x128xbf16, #tpu.memory_space<vmem>>, vector<1x384x128xbf16>
    %86 = vector.shape_cast %85 : vector<1x384x128xbf16> to vector<384x128xbf16>
    %cst_34 = arith.constant dense<0.000000e+00> : vector<32x128xf32>
    %87 = tpu.matmul %84, %86, %cst_34 {dimension_numbers = #tpu.dot_dimension_numbers<[1], [0], [0], [1], [0, 0, 1, 1], [], []>} : vector<32x384xbf16>, vector<384x128xbf16>, vector<32x128xf32> -> vector<32x128xf32>
    %c2_35 = arith.constant 2 : index
    %c0_36 = arith.constant 0 : index
    %c0_37 = arith.constant 0 : index
    %88 = vector.load %arg3[%c2_35, %c0_36, %c0_37] : memref<4x1x128xf32, #tpu.memory_space<vmem>>, vector<1x1x128xf32>
    %89 = vector.shape_cast %88 : vector<1x1x128xf32> to vector<1x128xf32>
    %90 = vector.broadcast %89 : vector<1x128xf32> to vector<32x128xf32>
    %91 = arith.addf %87, %90 : vector<32x128xf32>
    %cst_38 = arith.constant 0.000000e+00 : f32
    %92 = vector.broadcast %cst_38 : f32 to vector<32x128xf32>
    %93 = arith.maximumf %91, %92 : vector<32x128xf32>
    %c1_i32_39 = arith.constant 1 : i32
    %94 = tpu.dynamic_rotate %93 by %c1_i32_39 dim 0 : vector<32x128xf32>, i32 -> vector<32x128xf32>
    %cst_40 = arith.constant 0.000000e+00 : f32
    %95 = vector.shape_cast %22 : vector<32x1xi1> to vector<32x1xi1>
    %96 = vector.broadcast %95 : vector<32x1xi1> to vector<32x128xi1>
    %97 = vector.broadcast %cst_40 : f32 to vector<32x128xf32>
    %98 = arith.select %96, %94, %97 : vector<32x128xi1>, vector<32x128xf32>
    %c31_i32_41 = arith.constant 31 : i32
    %99 = tpu.dynamic_rotate %93 by %c31_i32_41 dim 0 : vector<32x128xf32>, i32 -> vector<32x128xf32>
    %cst_42 = arith.constant 0.000000e+00 : f32
    %100 = vector.shape_cast %24 : vector<32x1xi1> to vector<32x1xi1>
    %101 = vector.broadcast %100 : vector<32x1xi1> to vector<32x128xi1>
    %102 = vector.broadcast %cst_42 : f32 to vector<32x128xf32>
    %103 = arith.select %101, %99, %102 : vector<32x128xi1>, vector<32x128xf32>
    %104 = arith.truncf %98 : vector<32x128xf32> to vector<32x128xbf16>
    %105 = arith.truncf %93 : vector<32x128xf32> to vector<32x128xbf16>
    %106 = arith.truncf %103 : vector<32x128xf32> to vector<32x128xbf16>
    %107 = tpu.concatenate %104, %105, %106 in 1 : vector<32x128xbf16>, vector<32x128xbf16>, vector<32x128xbf16> -> vector<32x384xbf16>
    %c3 = arith.constant 3 : index
    %c0_43 = arith.constant 0 : index
    %c0_44 = arith.constant 0 : index
    %108 = vector.load %arg2[%c3, %c0_43, %c0_44] : memref<4x384x128xbf16, #tpu.memory_space<vmem>>, vector<1x384x128xbf16>
    %109 = vector.shape_cast %108 : vector<1x384x128xbf16> to vector<384x128xbf16>
    %cst_45 = arith.constant dense<0.000000e+00> : vector<32x128xf32>
    %110 = tpu.matmul %107, %109, %cst_45 {dimension_numbers = #tpu.dot_dimension_numbers<[1], [0], [0], [1], [0, 0, 1, 1], [], []>} : vector<32x384xbf16>, vector<384x128xbf16>, vector<32x128xf32> -> vector<32x128xf32>
    %c3_46 = arith.constant 3 : index
    %c0_47 = arith.constant 0 : index
    %c0_48 = arith.constant 0 : index
    %111 = vector.load %arg3[%c3_46, %c0_47, %c0_48] : memref<4x1x128xf32, #tpu.memory_space<vmem>>, vector<1x1x128xf32>
    %112 = vector.shape_cast %111 : vector<1x1x128xf32> to vector<1x128xf32>
    %113 = vector.broadcast %112 : vector<1x128xf32> to vector<32x128xf32>
    %114 = arith.addf %110, %113 : vector<32x128xf32>
    %115 = vector.shape_cast %114 : vector<32x128xf32> to vector<2x16x128xf32>
    %116 = vector.extract_strided_slice %115 {offsets = [0, 0, 0], sizes = [2, 16, 4], strides = [1, 1, 1]} : vector<2x16x128xf32> to vector<2x16x4xf32>
    %c0_49 = arith.constant 0 : index
    %c0_50 = arith.constant 0 : index
    %c0_51 = arith.constant 0 : index
    %117 = vector.load %arg4[%c0_49, %c0_50, %c0_51] : memref<2x16x4xf32, #tpu.memory_space<vmem>>, vector<2x16x4xf32>
    tpu.vector_store %arg4[%c0_49, %c0_50, %c0_51], %116 {strides = array<i32>} : memref<2x16x4xf32, #tpu.memory_space<vmem>>, vector<2x16x4xf32>,
    return
  }
  func.func @transform_0(%arg0: i32) -> (i32, i32, i32) {
    %c0_i32 = arith.constant 0 : i32
    %c0_i32_0 = arith.constant 0 : i32
    %c0_i32_1 = arith.constant 0 : i32
    return %arg0, %c0_i32, %c0_i32_0 : i32, i32, i32
  }
  func.func @transform_1(%arg0: i32) -> (i32, i32, i32) {
    %c0_i32 = arith.constant 0 : i32
    %c0_i32_0 = arith.constant 0 : i32
    %c0_i32_1 = arith.constant 0 : i32
    %c0_i32_2 = arith.constant 0 : i32
    return %c0_i32, %c0_i32_0, %c0_i32_1 : i32, i32, i32
  }
  func.func @transform_2(%arg0: i32) -> (i32, i32, i32) {
    %c0_i32 = arith.constant 0 : i32
    %c0_i32_0 = arith.constant 0 : i32
    %c0_i32_1 = arith.constant 0 : i32
    %c0_i32_2 = arith.constant 0 : i32
    return %c0_i32, %c0_i32_0, %c0_i32_1 : i32, i32, i32
  }
  func.func @transform_3(%arg0: i32) -> (i32, i32, i32) {
    %c0_i32 = arith.constant 0 : i32
    %c0_i32_0 = arith.constant 0 : i32
    %c0_i32_1 = arith.constant 0 : i32
    return %arg0, %c0_i32, %c0_i32_0 : i32, i32, i32
  }
}

</mosaic_0001>

<bundles_post_ra>
// kernel: simple_unet_pallas.1
= control target key start
LH: loop header
LB: loop body
LE: loop exit
PB: predicated region body
PF: predicated region fallthrough
CT: control target
= control target key end

     0   :  { %v24_v7 = vlaneseq  ;;  %vm19_vm0 = vcmask 31744   ;;  %vm2067_vm6 = vmmov 1   ;;  %s2580_s1 = inlined_call_operand.vmem [shape: bf16[4,384,128], index: 1, kind: input, shape index: {}]   ;;  %s2581_s0 = inlined_call_operand.vmem [shape: f32[2,16,4], index: 0, kind: input, shape index: {}]   ;;  %s2582_s2 = inlined_call_operand.vmem [shape: f32[4,1,128], index: 2, kind: input, shape index: {}]   ;;  %s2583_s3 = inlined_call_operand.vmem [shape: f32[2,16,4], index: 3, kind: output, shape index: {}]  }
   0x1   :  { %v1971_v0 = vld [vmem:[%s2580_s1 + $0x40] sm:$0xff]   ;;  %v1973_v2 = vld [vmem:[%s2580_s1 + $0x48] sm:$0xff]   ;;  %v1976_v5 = vld [vmem:[%s2580_s1 + $0x50] sm:$0xff]  }
   0x2   :  { %v1972_v1 = vld [vmem:[%s2580_s1] sm:$0xff]   ;;  %1738 = vmatprep.subr.bf16.mxu0 %v1971_v0  ;;  %v1975_v4 = vld [vmem:[%s2580_s1 + $0x8] sm:$0xff]   ;;  %v1978_v8 = vld [vmem:[%s2580_s1 + $0x10] sm:$0xff]   ;;  %v2121_v12 = vshrl.u32 %v24_v7, 7 }
   0x3   :  { %1739 = vmatpush3.bf16.msra.mxu0 %v1972_v1  ;;  %v1974_v3 = vld [vmem:[%s2580_s1 + $0x80] sm:$0xff]   ;;  %v1977_v6 = vld [vmem:[%s2580_s1 + $0x88] sm:$0xff]   ;;  %v1979_v9 = vld [vmem:[%s2580_s1 + $0x58] sm:$0xff]  }
   0x4   :  { %1740 = vmatprep.subr.bf16.mxu0 %v1973_v2  ;;  %1890 = vmatprep.subr.bf16.mxu1 %v1974_v3  ;;  %v1980_v10 = vld [vmem:[%s2580_s1 + $0x90] sm:$0xff]   ;;  %v1981_v11 = vld [vmem:[%s2580_s1 + $0x18] sm:$0xff]   ;;  %v1982_v13 = vld [vmem:[%s2580_s1 + $0x60] sm:$0xff]   ;;  %v26_v16 = vadd.s32 8, %v2121_v12  ;;  %v33_v19 = vand.u32 15, %v2121_v12  ;;  %v28_v20 = vadd.s32 24, %v2121_v12 }
   0x5   :  { %1891 = vmatpush3.bf16.msra.mxu1 %v1974_v3  ;;  %v1983_v14 = vld [vmem:[%s2580_s1 + $0x98] sm:$0xff]   ;;  %v1984_v15 = vld [vmem:[%s2580_s1 + $0x20] sm:$0xff]   ;;  %v1985_v18 = vld [vmem:[%s2580_s1 + $0x68] sm:$0xff]   ;;  %v27_v24 = vadd.s32 16, %v2121_v12  ;;  %vm89_vm1 = vcmp.lt.s32.totalorder %v2121_v12, 1  ;;  %vm110_vm3 = vcmp.lt.s32.totalorder %v2121_v12, 7 }
   0x6   :  { %1892 = vmatprep.subr.bf16.mxu1 %v1977_v6  ;;  %v1986_v17 = vld [vmem:[%s2580_s1 + $0xa0] sm:$0xff]   ;;  %v1987_v21 = vld [vmem:[%s2580_s1 + $0x28] sm:$0xff]   ;;  %v40_v22 = vand.u32 15, %v26_v16  ;;  %v1988_v25 = vld [vmem:[%s2580_s1 + $0x70] sm:$0xff]   ;;  %vm2155_vm2 = vcmp.ge.s32.totalorder %v33_v19, 1  ;;  %v54_v29 = vand.u32 15, %v28_v20 }
   0x7   :  { %1741 = vmatpush3.bf16.msra.mxu0 %v1975_v4  ;;  %v1989_v23 = vld [vmem:[%s2580_s1 + $0xa8] sm:$0xff]   ;;  %v1990_v26 = vld [vmem:[%s2580_s1 + $0x30] sm:$0xff]   ;;  %v15_v30 = vld [vmem:[%s2581_s0] sm:$0xff]  ;;  %v47_v34 = vand.u32 15, %v27_v24 }
   0x8   :  { %1742 = vmatprep.subr.bf16.mxu0 %v1976_v5  ;;  %v1992_v28 = vld [vmem:[%s2580_s1 + $0xb0] sm:$0xff]   ;;  %v16_v31 = vld [vmem:[%s2581_s0 + $0x8] sm:$0xff]  ;;  %v18_v32 = vld [vmem:[%s2581_s0 + $0x18] sm:$0xff]  ;;  %vm2172_vm4 = vcmp.lt.s32.totalorder %v40_v22, 15  ;;  %v20_v36 = vsel %vm19_vm0, %v15_v30, 0.0  ;;  %vm84_vm8 = vcmp.lt.s32.totalorder %v54_v29, 15 }
   0x9   :  { %1893 = vmatpush3.bf16.msra.mxu1 %v1977_v6  ;;  %v1991_v35 = vld [vmem:[%s2580_s1 + $0x78] sm:$0xff]   ;;  %v21_v37 = vsel %vm19_vm0, %v16_v31, 0.0  ;;  %v23_v38 = vsel %vm19_vm0, %v18_v32, 0.0  ;;  %vm2184_vm5 = vmpackc.low %vm19_vm0, %vm19_vm0  ;;  %v1463_v40 = vpack.c.bf16 %v16_v31, %v15_v30  ;;  %v85_v42 = vrot.slane %v20_v36, 7  ;;  %v17_v49 = vld [vmem:[%s2581_s0 + $0x10] sm:$0xff] }
   0xa   :  { %1894 = vmatprep.subr.bf16.mxu1 %v1980_v10  ;;  %v1993_v41 = vld [vmem:[%s2580_s1 + $0x38] sm:$0xff]   ;;  %v86_v43 = vrot.slane %v21_v37, 7  ;;  %v88_v44 = vrot.slane %v23_v38, 7  ;;  %v106_v45 = vrot.slane %v20_v36, 1  ;;  %v107_v46 = vrot.slane %v21_v37, 1  ;;  %vm2196_vm7 = vmpackc.low %vm2067_vm6, %vm2155_vm2  ;;  %v1995_v58 = vld [vmem:[%s2580_s1 + $0x100] sm:$0xff]  }
   0xb   :  { %1743 = vmatpush3.bf16.msra.mxu0 %v1978_v8  ;;  %v109_v47 = vrot.slane %v23_v38, 1  ;;  %1464 = vmatprep.mubr.msk.bf16.mxu0 %vm2184_vm5, %v1463_v40  ;;  %v1994_v52 = vld [vmem:[%s2580_s1 + $0xb8] sm:$0xff]   ;;  %v22_v53 = vsel %vm19_vm0, %v17_v49, 0.0  ;;  %vm2214_vm9 = vmpackc.low %vm2172_vm4, %vm2067_vm6  ;;  %vm2218_vm10 = vcmp.ge.s32.totalorder %v47_v34, 1  ;;  %v1996_v0 = vld [vmem:[%s2580_s1 + $0x140] sm:$0xff]   ;;  %v1469_v3 = vpack.c.bf16 %v18_v32, %v17_v49 }
   0xc   :  { %1744 = vmatprep.subr.bf16.mxu0 %v1979_v9  ;;  %v92_v50 = vsel %vm89_vm1, %v85_v42, %v86_v43  ;;  %v93_v51 = vsel %vm89_vm1, %v88_v44, %v85_v42  ;;  %v108_v56 = vrot.slane %v22_v53, 1  ;;  %v113_v57 = vsel %vm110_vm3, %v106_v45, %v107_v46  ;;  %vm2228_vm11 = vmpackc.low %vm84_vm8, %vm2067_vm6  ;;  %v1997_v5 = vld [vmem:[%s2580_s1 + $0xc0] sm:$0xff]   ;;  %v1998_v6 = vld [vmem:[%s2580_s1 + $0x108] sm:$0xff]  }
   0xd   :  { %1895 = vmatpush3.bf16.msra.mxu1 %v1980_v10  ;;  %v1466_v60 = vpack.c.bf16 %v92_v50, %v93_v51  ;;  %v114_v63 = vsel %vm110_vm3, %v109_v47, %v106_v45  ;;  %v87_v1 = vrot.slane %v22_v53, 7  ;;  %vm2244_vm12 = vmpackc.low %vm2067_vm6, %vm2218_vm10  ;;  %v1999_v8 = vld [vmem:[%s2580_s1 + $0x148] sm:$0xff]   ;;  %v2003_v16 = vld [vmem:[%s2580_s1 + $0xd0] sm:$0xff]  }
   0xe   :  { %1896 = vmatprep.subr.bf16.mxu1 %v1983_v14  ;;  %v112_v61 = vsel %vm110_vm3, %v107_v46, %v108_v56  ;;  %v111_v62 = vsel %vm110_vm3, %v108_v56, %v109_v47  ;;  %v2000_v9 = vld [vmem:[%s2580_s1 + $0xc8] sm:$0xff]   ;;  %v2006_v19 = vld [vmem:[%s2580_s1 + $0xd8] sm:$0xff]   ;;  %v2007_v20 = vld [vmem:[%s2580_s1 + $0x120] sm:$0xff]  }
   0xf   :  { %1745 = vmatpush3.bf16.msra.mxu0 %v1981_v11  ;;  %v1475_v2 = vpack.c.bf16 %v112_v61, %v113_v57  ;;  %v1478_v7 = vpack.c.bf16 %v114_v63, %v111_v62  ;;  %v90_v10 = vsel %vm89_vm1, %v87_v1, %v88_v44  ;;  %v91_v11 = vsel %vm89_vm1, %v86_v43, %v87_v1  ;;  %v2009_v22 = vld [vmem:[%s2580_s1 + $0xe0] sm:$0xff]   ;;  %v2011_v24 = vld [vmem:[%s2580_s1 + $0x168] sm:$0xff]   ;;  %v2014_v27 = vld [vmem:[%s2580_s1 + $0x170] sm:$0xff]  }
  0x10   :  { %1746 = vmatprep.subr.bf16.mxu0 %v1982_v13  ;;  %v1472_v13 = vpack.c.bf16 %v90_v10, %v91_v11  ;;  %v2016_v29 = vld [vmem:[%s2580_s1 + $0x138] sm:$0xff]   ;;  %v2019_v32 = vld [vmem:[%s2580_s1 + $0x1c0] sm:$0xff]  }
  0x11   :  { %1897 = vmatpush3.bf16.msra.mxu1 %v1983_v14  ;;  %1906 = vmatprep.mubr.msk.bf16.mxu1 %vm2214_vm9, %v1475_v2  ;;  %v2001_v14 = vld [vmem:[%s2580_s1 + $0x110] sm:$0xff]   ;;  %v2017_v30 = vld [vmem:[%s2580_s1 + $0x178] sm:$0xff]   ;;  %v2334_v33 = vld [vmem:[%s2580_s1 + $0x200] sm:$0xff]  }
  0x12   :  { %1898 = vmatprep.subr.bf16.mxu1 %v1986_v17  ;;  %v2018_v31 = vld [vmem:[%s2580_s1 + $0xf8] sm:$0xff]   ;;  %v1437_v36 = vld [vmem:[%s2582_s2] ss:$0 sm:$0xff]  ;;  %v1701_v54 = vld [vmem:[%s2582_s2 + $0x3] ss:$0 sm:$0xff] }
  0x13   :  { %1747 = vmatpush3.bf16.msra.mxu0 %v1984_v15  ;;  %v2002_v15 = vld [vmem:[%s2580_s1 + $0x150] sm:$0xff]  }
  0x14   :  { %1748 = vmatprep.subr.bf16.mxu0 %v1985_v18  ;;  %v2005_v18 = vld [vmem:[%s2580_s1 + $0x158] sm:$0xff]  }
  0x15   :  { %1899 = vmatpush3.bf16.msra.mxu1 %v1986_v17  ;;  %v2004_v17 = vld [vmem:[%s2580_s1 + $0x118] sm:$0xff]  }
  0x16   :  { %1900 = vmatprep.subr.bf16.mxu1 %v1989_v23 }
  0x17   :  { %1749 = vmatpush3.bf16.msra.mxu0 %v1987_v21  ;;  %v2008_v21 = vld [vmem:[%s2580_s1 + $0x160] sm:$0xff]  }
  0x18   :  { %1750 = vmatprep.subr.bf16.mxu0 %v1988_v25  ;;  %v2012_v25 = vld [vmem:[%s2580_s1 + $0xe8] sm:$0xff]  }
  0x19   :  { %1901 = vmatpush3.bf16.msra.mxu1 %v1989_v23  ;;  %v2010_v23 = vld [vmem:[%s2580_s1 + $0x128] sm:$0xff]  }
  0x1a   :  { %1902 = vmatprep.subr.bf16.mxu1 %v1992_v28 }
  0x1b   :  { %1751 = vmatpush3.bf16.msra.mxu0 %v1990_v26  ;;  %v2013_v26 = vld [vmem:[%s2580_s1 + $0x130] sm:$0xff]  }
  0x1c   :  { %1752 = vmatprep.subr.bf16.mxu0 %v1991_v35 }
  0x1d   :  { %1903 = vmatpush3.bf16.msra.mxu1 %v1992_v28  ;;  %v2015_v28 = vld [vmem:[%s2580_s1 + $0xf0] sm:$0xff]  }
  0x1e   :  { %1904 = vmatprep.subr.bf16.mxu1 %v1994_v52 }
  0x1f   :  { %1753 = vmatpush3.bf16.msra.mxu0 %v1993_v41 }
  0x20   :  { %1776 = vmatprep.subr.bf16.mxu0 %v1995_v58 }
  0x21   :  { %1905 = vmatpush3.bf16.msra.mxu1 %v1994_v52 }
  0x22   :  { %1467 = vmatmul.mubr.msk.bf16.vlgmr.msra.gmra.mrb[0].mxu0 %vm2196_vm7, %v1466_v60  ;;  %1910 = vmatprep.subr.bf16.mxu1 %v1996_v0 }
  0x23   :  { %1470 = vmatprep.mubr.msk.bf16.mxu0 %vm2184_vm5, %v1469_v3  ;;  %1777 = vmatpush3.bf16.msra.mxu0 %v1997_v5 }
  0x24   :  { %1907 = vmatmul.mubr.msk.bf16.vlgmr.msra.gmra.mrb[0].mxu1 %vm2228_vm11, %v1478_v7  ;;  %1778 = vmatprep.subr.bf16.mxu0 %v1998_v6 }
  0x25   :  { %1911 = vmatpush3.bf16.msra.mxu1 %v1996_v0 }
  0x26   :  { %1912 = vmatprep.subr.bf16.mxu1 %v1999_v8 }
  0x27   :  { %1779 = vmatpush3.bf16.msra.mxu0 %v2000_v9 }
  0x28   :  { %1780 = vmatprep.subr.bf16.mxu0 %v2001_v14 }
  0x29   :  { %1913 = vmatpush3.bf16.msra.mxu1 %v1999_v8 }
  0x2a   :  { %1473 = vmatmul.mubr.msk.bf16.gmra.mrb[4].mxu0 %vm2244_vm12, %v1472_v13  ;;  %1914 = vmatprep.subr.bf16.mxu1 %v2002_v15 }
  0x2b   :  { %1781 = vmatpush3.bf16.msra.mxu0 %v2003_v16 }
  0x2c   :  { %1782 = vmatprep.subr.bf16.mxu0 %v2004_v17 }
  0x2d   :  { %1915 = vmatpush3.bf16.msra.mxu1 %v2002_v15 }
  0x2e   :  { %1916 = vmatprep.subr.bf16.mxu1 %v2005_v18 }
  0x2f   :  { %1783 = vmatpush3.bf16.msra.mxu0 %v2006_v19 }
  0x30   :  { %1784 = vmatprep.subr.bf16.mxu0 %v2007_v20 }
  0x31   :  { %1917 = vmatpush3.bf16.msra.mxu1 %v2005_v18 }
  0x32   :  { %1918 = vmatprep.subr.bf16.mxu1 %v2008_v21 }
  0x33   :  { %1785 = vmatpush3.bf16.msra.mxu0 %v2009_v22 }
  0x34   :  { %1786 = vmatprep.subr.bf16.mxu0 %v2010_v23  ;;  %v2021_v23 = vld [vmem:[%s2580_s1 + $0x180] sm:$0xff]  }
  0x35   :  { %1919 = vmatpush3.bf16.msra.mxu1 %v2008_v21 }
  0x36   :  { %1920 = vmatprep.subr.bf16.mxu1 %v2011_v24 }
  0x37   :  { %1787 = vmatpush3.bf16.msra.mxu0 %v2012_v25 }
  0x38   :  { %1788 = vmatprep.subr.bf16.mxu0 %v2013_v26 }
  0x39   :  { %1921 = vmatpush3.bf16.msra.mxu1 %v2011_v24 }
  0x3a   :  { %1922 = vmatprep.subr.bf16.mxu1 %v2014_v27 }
  0x3b   :  { %1789 = vmatpush3.bf16.msra.mxu0 %v2015_v28  ;;  %v2023_v28 = vld [vmem:[%s2580_s1 + $0x208] sm:$0xff]  }
  0x3c   :  { %1790 = vmatprep.subr.bf16.mxu0 %v2016_v29  ;;  %v2024_v29 = vld [vmem:[%s2580_s1 + $0x188] sm:$0xff]  }
  0x3d   :  { %1923 = vmatpush3.bf16.msra.mxu1 %v2014_v27  ;;  %v2022_v27 = vld [vmem:[%s2580_s1 + $0x1c8] sm:$0xff]  }
  0x3e   :  { %1924 = vmatprep.subr.bf16.mxu1 %v2017_v30 }
  0x3f   :  { %1791 = vmatpush3.bf16.msra.mxu0 %v2018_v31  ;;  %v2026_v31 = vld [vmem:[%s2580_s1 + $0x210] sm:$0xff]  }
  0x40   :  { %1814 = vmatprep.subr.bf16.mxu0 %v2019_v32  ;;  %v2027_v32 = vld [vmem:[%s2580_s1 + $0x190] sm:$0xff]  }
  0x41   :  { %1925 = vmatpush3.bf16.msra.mxu1 %v2017_v30  ;;  %v2025_v30 = vld [vmem:[%s2580_s1 + $0x1d0] sm:$0xff]  }
  0x42   :  { %1930 = vmatprep.subr.bf16.mxu1 %v2334_v33 }
  0xf5   :  { %v1754_v34 = vpop.f32.mrb[0].mxu0 }
  0xf6   :  { %v1755_v35 = vpop.f32.mrb[1].mxu0 }
  0xf7   :  { %v1756_v37 = vadd.f32 %v1755_v35, %v1754_v34  ;;  %v1757_v38 = vpop.f32.mrb[2].mxu0  ;;  %v1908_v40 = vpop.f32.mrb[0].mxu1  ;;  %v2029_v34 = vld [vmem:[%s2580_s1 + $0x218] sm:$0xff]  }
  0xf8   :  { %v1758_v39 = vpop.f32.mrb[3].mxu0  ;;  %v415_v43 = vpop.f32.mrb[1].mxu1  ;;  %v2030_v35 = vld [vmem:[%s2580_s1 + $0x198] sm:$0xff]  }
  0xf9   :  { %v1759_v41 = vadd.f32 %v1758_v39, %v1757_v38  ;;  %v367_v42 = vadd.f32 %v1756_v37, %v1437_v36  ;;  %v1909_v44 = vpop.f32.mrb[2].mxu1  ;;  %v2032_v37 = vld [vmem:[%s2580_s1 + $0x220] sm:$0xff]   ;;  %v2034_v39 = vld [vmem:[%s2580_s1 + $0x1e8] sm:$0xff]  }
  0xfa   :  { %v418_v47 = vpop.f32.mrb[3].mxu1  ;;  %v2033_v38 = vld [vmem:[%s2580_s1 + $0x1a0] sm:$0xff]  }
  0xfb   :  { %v416_v45 = vadd.f32 %v415_v43, %v367_v42  ;;  %v370_v46 = vadd.f32 %v1759_v41, %v1437_v36  ;;  %v2036_v41 = vld [vmem:[%s2580_s1 + $0x1a8] sm:$0xff]   ;;  %v2037_v42 = vld [vmem:[%s2580_s1 + $0x1f0] sm:$0xff]  }
  0xfc   :  { %v2038_v43 = vld [vmem:[%s2580_s1 + $0x230] sm:$0xff]  }
  0xfd   :  { %v430_v49 = vmax.f32 %v416_v45, 0.0  ;;  %v419_v50 = vadd.f32 %v418_v47, %v370_v46  ;;  %v1760_v51 = vpop.f32.mrb[4].mxu0  ;;  %v2040_v45 = vld [vmem:[%s2580_s1 + $0x1f8] sm:$0xff]  }
  0xfe   :  { %v1761_v52 = vpop.f32.mrb[5].mxu0  ;;  %v2041_v46 = vld [vmem:[%s2580_s1 + $0x238] sm:$0xff]  }
  0xff   :  { %v431_v53 = vmax.f32 %v419_v50, 0.0  ;;  %v1762_v55 = vadd.f32 %v1761_v52, %v1760_v51  ;;  %v1763_v56 = vpop.f32.mrb[6].mxu0  ;;  %v434_v57 = vrot.slane %v430_v49, 7  ;;  %v446_v58 = vrot.slane %v430_v49, 1  ;;  %v2042_v47 = vld [vmem:[%s2580_s1 + $0x1b8] sm:$0xff]   ;;  %v2437_v50 = vld [vmem:[%s2580_s1 + $0x2c0] sm:$0xff]  }
 0x100   :  { %v1764_v60 = vpop.f32.mrb[7].mxu0 }
 0x101   :  { %v435_v61 = vrot.slane %v431_v53, 7  ;;  %v447_v62 = vrot.slane %v431_v53, 1  ;;  %v375_v63 = vadd.f32 %v1762_v55, %v1437_v36  ;;  %v1765_v0 = vadd.f32 %v1764_v60, %v1763_v56  ;;  %v1529_v55 = vld [vmem:[%s2582_s2 + $0x1] ss:$0 sm:$0xff] }
 0x102   :  { %v460_v1 = vpack.c.bf16 %v431_v53, %v430_v49  ;;  %v2043_v49 = vld [vmem:[%s2580_s1 + $0x280] sm:$0xff]  }
 0x103   :  { %v440_v2 = vsel %vm89_vm1, %v434_v57, %v435_v61  ;;  %v424_v3 = vadd.f32 %v1908_v40, %v375_v63  ;;  %v378_v5 = vadd.f32 %v1765_v0, %v1437_v36  ;;  %v452_v6 = vsel %vm110_vm3, %v446_v58, %v447_v62  ;;  %v2031_v36 = vld [vmem:[%s2580_s1 + $0x1e0] sm:$0xff]   ;;  %v2035_v40 = vld [vmem:[%s2580_s1 + $0x228] sm:$0xff]  }
 0x104   :  { %697 = vmatprep.mubr.bf16.mxu0 %v460_v1 }
 0x105   :  { %v432_v7 = vmax.f32 %v424_v3, 0.0  ;;  %v427_v8 = vadd.f32 %v1909_v44, %v378_v5  ;;  %v2039_v44 = vld [vmem:[%s2580_s1 + $0x1b0] sm:$0xff]  }
 0x107   :  { %v436_v9 = vrot.slane %v432_v7, 7  ;;  %v448_v10 = vrot.slane %v432_v7, 1  ;;  %v433_v11 = vmax.f32 %v427_v8, 0.0 }
 0x109   :  { %v437_v13 = vrot.slane %v433_v11, 7  ;;  %v449_v14 = vrot.slane %v433_v11, 1  ;;  %v451_v15 = vsel %vm110_vm3, %v447_v62, %v448_v10  ;;  %v461_v16 = vpack.c.bf16 %v433_v11, %v432_v7 }
 0x10a   :  { %v1561_v17 = vpack.c.bf16 %v451_v15, %v452_v6  ;;  %v439_v18 = vsel %vm89_vm1, %v435_v61, %v436_v9 }
 0x10b   :  { %v441_v19 = vsel %vm89_vm1, %v437_v13, %v434_v57  ;;  %v450_v20 = vsel %vm110_vm3, %v448_v10, %v449_v14  ;;  %v453_v21 = vsel %vm110_vm3, %v449_v14, %v446_v58  ;;  %v438_v22 = vsel %vm89_vm1, %v436_v9, %v437_v13 }
 0x10c   :  { %v1555_v24 = vpack.c.bf16 %v440_v2, %v441_v19  ;;  %1926 = vmatprep.mubr.msk.bf16.mxu1 %vm2214_vm9, %v1561_v17  ;;  %v1564_v25 = vpack.c.bf16 %v453_v21, %v450_v20  ;;  %v1558_v26 = vpack.c.bf16 %v438_v22, %v439_v18 }
 0x10e   :  { %1556 = vmatmul.mubr.msk.bf16.vlgmr.msra.gmra.mrb[8].mxu0 %vm2196_vm7, %v1555_v24  ;;  %1927 = vmatmul.mubr.msk.bf16.vlgmr.msra.gmra.mrb[4].mxu1 %vm2228_vm11, %v1564_v25 }
 0x10f   :  { %705 = vmatprep.mubr.bf16.mxu0 %v461_v16  ;;  %1815 = vmatpush3.bf16.msra.mxu0 %v2021_v23 }
 0x110   :  { %1931 = vmatpush3.bf16.msra.mxu1 %v2334_v33  ;;  %1816 = vmatprep.subr.bf16.mxu0 %v2022_v27  ;;  %v2028_v33 = vld [vmem:[%s2580_s1 + $0x1d8] sm:$0xff]  }
 0x111   :  { %1932 = vmatprep.subr.bf16.mxu1 %v2023_v28 }
 0x113   :  { %1817 = vmatpush3.bf16.msra.mxu0 %v2024_v29 }
 0x114   :  { %1933 = vmatpush3.bf16.msra.mxu1 %v2023_v28  ;;  %1818 = vmatprep.subr.bf16.mxu0 %v2025_v30 }
 0x115   :  { %1934 = vmatprep.subr.bf16.mxu1 %v2026_v31 }
 0x116   :  { %1559 = vmatmul.mubr.msk.bf16.gmra.mrb[12].mxu0 %vm2244_vm12, %v1558_v26 }
 0x117   :  { %1819 = vmatpush3.bf16.msra.mxu0 %v2027_v32 }
 0x118   :  { %1935 = vmatpush3.bf16.msra.mxu1 %v2026_v31  ;;  %1820 = vmatprep.subr.bf16.mxu0 %v2028_v33 }
 0x119   :  { %1936 = vmatprep.subr.bf16.mxu1 %v2029_v34 }
 0x11b   :  { %1821 = vmatpush3.bf16.msra.mxu0 %v2030_v35 }
 0x11c   :  { %1937 = vmatpush3.bf16.msra.mxu1 %v2029_v34  ;;  %1822 = vmatprep.subr.bf16.mxu0 %v2031_v36 }
 0x11d   :  { %1938 = vmatprep.subr.bf16.mxu1 %v2032_v37 }
 0x11f   :  { %1823 = vmatpush3.bf16.msra.mxu0 %v2033_v38 }
 0x120   :  { %1939 = vmatpush3.bf16.msra.mxu1 %v2032_v37  ;;  %1824 = vmatprep.subr.bf16.mxu0 %v2034_v39  ;;  %v2045_v39 = vld [vmem:[%s2580_s1 + $0x240] sm:$0xff]  }
 0x121   :  { %1940 = vmatprep.subr.bf16.mxu1 %v2035_v40 }
 0x123   :  { %1825 = vmatpush3.bf16.msra.mxu0 %v2036_v41 }
 0x124   :  { %1941 = vmatpush3.bf16.msra.mxu1 %v2035_v40  ;;  %1826 = vmatprep.subr.bf16.mxu0 %v2037_v42 }
 0x125   :  { %1942 = vmatprep.subr.bf16.mxu1 %v2038_v43 }
 0x127   :  { %1827 = vmatpush3.bf16.msra.mxu0 %v2039_v44  ;;  %v2047_v44 = vld [vmem:[%s2580_s1 + $0x2c8] sm:$0xff]  }
 0x128   :  { %1943 = vmatpush3.bf16.msra.mxu1 %v2038_v43  ;;  %1828 = vmatprep.subr.bf16.mxu0 %v2040_v45  ;;  %v2046_v43 = vld [vmem:[%s2580_s1 + $0x288] sm:$0xff]  }
 0x129   :  { %1944 = vmatprep.subr.bf16.mxu1 %v2041_v46  ;;  %v2048_v45 = vld [vmem:[%s2580_s1 + $0x248] sm:$0xff]  }
 0x12b   :  { %1829 = vmatpush3.bf16.msra.mxu0 %v2042_v47  ;;  %v2050_v47 = vld [vmem:[%s2580_s1 + $0x2d0] sm:$0xff]  }
 0x12c   :  { %1945 = vmatpush3.bf16.msra.mxu1 %v2041_v46  ;;  %1852 = vmatprep.subr.bf16.mxu0 %v2043_v49  ;;  %v2049_v46 = vld [vmem:[%s2580_s1 + $0x290] sm:$0xff]  }
 0x12d   :  { %1950 = vmatprep.subr.bf16.mxu1 %v2437_v50  ;;  %v2051_v49 = vld [vmem:[%s2580_s1 + $0x250] sm:$0xff]  }
 0x1e1   :  { %v1792_v51 = vpop.f32.mrb[8].mxu0  ;;  %v1928_v52 = vpop.f32.mrb[4].mxu1 }
 0x1e2   :  { %v1793_v53 = vpop.f32.mrb[9].mxu0  ;;  %v748_v56 = vpop.f32.mrb[5].mxu1 }
 0x1e3   :  { %v1794_v57 = vadd.f32 %v1793_v53, %v1792_v51  ;;  %v1795_v58 = vpop.f32.mrb[10].mxu0  ;;  %v1929_v60 = vpop.f32.mrb[6].mxu1  ;;  %v2053_v51 = vld [vmem:[%s2580_s1 + $0x2d8] sm:$0xff]   ;;  %v2055_v53 = vld [vmem:[%s2580_s1 + $0x2a0] sm:$0xff]  }
 0x1e4   :  { %v1796_v61 = vpop.f32.mrb[11].mxu0  ;;  %v751_v62 = vpop.f32.mrb[7].mxu1 }
 0x1e5   :  { %v700_v63 = vadd.f32 %v1794_v57, %v1529_v55  ;;  %v1797_v0 = vadd.f32 %v1796_v61, %v1795_v58  ;;  %v2058_v57 = vld [vmem:[%s2580_s1 + $0x2a8] sm:$0xff]   ;;  %v2061_v61 = vld [vmem:[%s2580_s1 + $0x2b0] sm:$0xff]  }
 0x1e6   :  { %v2059_v58 = vld [vmem:[%s2580_s1 + $0x2e8] sm:$0xff]  }
 0x1e7   :  { %v749_v1 = vadd.f32 %v748_v56, %v700_v63  ;;  %v703_v2 = vadd.f32 %v1797_v0, %v1529_v55  ;;  %v2057_v56 = vld [vmem:[%s2580_s1 + $0x260] sm:$0xff]   ;;  %v2063_v63 = vld [vmem:[%s2580_s1 + $0x270] sm:$0xff]   ;;  %v2064_v0 = vld [vmem:[%s2580_s1 + $0x2b8] sm:$0xff]  }
 0x1e9   :  { %v763_v3 = vmax.f32 %v749_v1, 0.0  ;;  %v752_v5 = vadd.f32 %v751_v62, %v703_v2  ;;  %v1798_v6 = vpop.f32.mrb[12].mxu0  ;;  %v2062_v62 = vld [vmem:[%s2580_s1 + $0x2f0] sm:$0xff]   ;;  %v2065_v1 = vld [vmem:[%s2580_s1 + $0x2f8] sm:$0xff]  }
 0x1ea   :  { %v1799_v7 = vpop.f32.mrb[13].mxu0  ;;  %v2066_v2 = vld [vmem:[%s2580_s1 + $0x278] sm:$0xff]  }
 0x1eb   :  { %v764_v8 = vmax.f32 %v752_v5, 0.0  ;;  %v1800_v9 = vadd.f32 %v1799_v7, %v1798_v6  ;;  %v1801_v10 = vpop.f32.mrb[14].mxu0  ;;  %v767_v11 = vrot.slane %v763_v3, 7  ;;  %v779_v13 = vrot.slane %v763_v3, 1  ;;  %v1615_v7 = vld [vmem:[%s2582_s2 + $0x2] ss:$0 sm:$0xff] }
 0x1ec   :  { %v1802_v14 = vpop.f32.mrb[15].mxu0 }
 0x1ed   :  { %v768_v15 = vrot.slane %v764_v8, 7  ;;  %v780_v16 = vrot.slane %v764_v8, 1  ;;  %v708_v17 = vadd.f32 %v1800_v9, %v1529_v55  ;;  %v1803_v18 = vadd.f32 %v1802_v14, %v1801_v10 }
 0x1ee   :  { %v793_v19 = vpack.c.bf16 %v764_v8, %v763_v3 }
 0x1ef   :  { %v773_v20 = vsel %vm89_vm1, %v767_v11, %v768_v15  ;;  %v757_v21 = vadd.f32 %v1928_v52, %v708_v17  ;;  %v711_v22 = vadd.f32 %v1803_v18, %v1529_v55  ;;  %v785_v23 = vsel %vm110_vm3, %v779_v13, %v780_v16  ;;  %v2054_v52 = vld [vmem:[%s2580_s1 + $0x258] sm:$0xff]   ;;  %v2056_v55 = vld [vmem:[%s2580_s1 + $0x2e0] sm:$0xff]  }
 0x1f0   :  { %1030 = vmatprep.mubr.bf16.mxu0 %v793_v19 }
 0x1f1   :  { %v765_v24 = vmax.f32 %v757_v21, 0.0  ;;  %v760_v25 = vadd.f32 %v1929_v60, %v711_v22  ;;  %v2060_v60 = vld [vmem:[%s2580_s1 + $0x268] sm:$0xff]  }
 0x1f3   :  { %v769_v26 = vrot.slane %v765_v24, 7  ;;  %v781_v27 = vrot.slane %v765_v24, 1  ;;  %v766_v28 = vmax.f32 %v760_v25, 0.0 }
 0x1f5   :  { %v770_v29 = vrot.slane %v766_v28, 7  ;;  %v782_v30 = vrot.slane %v766_v28, 1  ;;  %v784_v31 = vsel %vm110_vm3, %v780_v16, %v781_v27  ;;  %v794_v32 = vpack.c.bf16 %v766_v28, %v765_v24 }
 0x1f6   :  { %v1647_v33 = vpack.c.bf16 %v784_v31, %v785_v23  ;;  %v772_v34 = vsel %vm89_vm1, %v768_v15, %v769_v26 }
 0x1f7   :  { %v774_v35 = vsel %vm89_vm1, %v770_v29, %v767_v11  ;;  %v783_v36 = vsel %vm110_vm3, %v781_v27, %v782_v30  ;;  %v786_v37 = vsel %vm110_vm3, %v782_v30, %v779_v13  ;;  %v771_v38 = vsel %vm89_vm1, %v769_v26, %v770_v29 }
 0x1f8   :  { %v1641_v40 = vpack.c.bf16 %v773_v20, %v774_v35  ;;  %1946 = vmatprep.mubr.msk.bf16.mxu1 %vm2214_vm9, %v1647_v33  ;;  %v1650_v41 = vpack.c.bf16 %v786_v37, %v783_v36  ;;  %v1644_v42 = vpack.c.bf16 %v771_v38, %v772_v34 }
 0x1fa   :  { %1642 = vmatmul.mubr.msk.bf16.vlgmr.msra.gmra.mrb[16].mxu0 %vm2196_vm7, %v1641_v40  ;;  %1947 = vmatmul.mubr.msk.bf16.vlgmr.msra.gmra.mrb[8].mxu1 %vm2228_vm11, %v1650_v41 }
 0x1fb   :  { %1038 = vmatprep.mubr.bf16.mxu0 %v794_v32  ;;  %1853 = vmatpush3.bf16.msra.mxu0 %v2045_v39 }
 0x1fc   :  { %1951 = vmatpush3.bf16.msra.mxu1 %v2437_v50  ;;  %1854 = vmatprep.subr.bf16.mxu0 %v2046_v43  ;;  %v2052_v50 = vld [vmem:[%s2580_s1 + $0x298] sm:$0xff]  }
 0x1fd   :  { %1952 = vmatprep.subr.bf16.mxu1 %v2047_v44 }
 0x1ff   :  { %1855 = vmatpush3.bf16.msra.mxu0 %v2048_v45 }
 0x200   :  { %1953 = vmatpush3.bf16.msra.mxu1 %v2047_v44  ;;  %1856 = vmatprep.subr.bf16.mxu0 %v2049_v46 }
 0x201   :  { %1954 = vmatprep.subr.bf16.mxu1 %v2050_v47 }
 0x202   :  { %1645 = vmatmul.mubr.msk.bf16.gmra.mrb[20].mxu0 %vm2244_vm12, %v1644_v42 }
 0x203   :  { %1857 = vmatpush3.bf16.msra.mxu0 %v2051_v49 }
 0x204   :  { %1955 = vmatpush3.bf16.msra.mxu1 %v2050_v47  ;;  %1858 = vmatprep.subr.bf16.mxu0 %v2052_v50 }
 0x205   :  { %1956 = vmatprep.subr.bf16.mxu1 %v2053_v51 }
 0x207   :  { %1859 = vmatpush3.bf16.msra.mxu0 %v2054_v52 }
 0x208   :  { %1957 = vmatpush3.bf16.msra.mxu1 %v2053_v51  ;;  %1860 = vmatprep.subr.bf16.mxu0 %v2055_v53 }
 0x209   :  { %1958 = vmatprep.subr.bf16.mxu1 %v2056_v55 }
 0x20b   :  { %1861 = vmatpush3.bf16.msra.mxu0 %v2057_v56 }
 0x20c   :  { %1959 = vmatpush3.bf16.msra.mxu1 %v2056_v55  ;;  %1862 = vmatprep.subr.bf16.mxu0 %v2058_v57 }
 0x20d   :  { %1960 = vmatprep.subr.bf16.mxu1 %v2059_v58 }
 0x20f   :  { %1863 = vmatpush3.bf16.msra.mxu0 %v2060_v60 }
 0x210   :  { %1961 = vmatpush3.bf16.msra.mxu1 %v2059_v58  ;;  %1864 = vmatprep.subr.bf16.mxu0 %v2061_v61 }
 0x211   :  { %1962 = vmatprep.subr.bf16.mxu1 %v2062_v62 }
 0x213   :  { %1865 = vmatpush3.bf16.msra.mxu0 %v2063_v63 }
 0x214   :  { %1963 = vmatpush3.bf16.msra.mxu1 %v2062_v62  ;;  %1866 = vmatprep.subr.bf16.mxu0 %v2064_v0 }
 0x215   :  { %1964 = vmatprep.subr.bf16.mxu1 %v2065_v1 }
 0x217   :  { %1867 = vmatpush3.bf16.msra.mxu0 %v2066_v2 }
 0x218   :  { %1965 = vmatpush3.bf16.msra.mxu1 %v2065_v1 }
 0x2cd   :  { %v1830_v3 = vpop.f32.mrb[16].mxu0  ;;  %v1948_v5 = vpop.f32.mrb[8].mxu1 }
 0x2ce   :  { %v1831_v6 = vpop.f32.mrb[17].mxu0  ;;  %v1081_v8 = vpop.f32.mrb[9].mxu1 }
 0x2cf   :  { %v1832_v9 = vadd.f32 %v1831_v6, %v1830_v3  ;;  %v1833_v10 = vpop.f32.mrb[18].mxu0  ;;  %v1949_v11 = vpop.f32.mrb[10].mxu1 }
 0x2d0   :  { %v1834_v13 = vpop.f32.mrb[19].mxu0  ;;  %v1084_v14 = vpop.f32.mrb[11].mxu1 }
 0x2d1   :  { %v1033_v15 = vadd.f32 %v1832_v9, %v1615_v7  ;;  %v1835_v16 = vadd.f32 %v1834_v13, %v1833_v10 }
 0x2d3   :  { %v1082_v17 = vadd.f32 %v1081_v8, %v1033_v15  ;;  %v1036_v18 = vadd.f32 %v1835_v16, %v1615_v7 }
 0x2d5   :  { %v1096_v19 = vmax.f32 %v1082_v17, 0.0  ;;  %v1085_v20 = vadd.f32 %v1084_v14, %v1036_v18  ;;  %v1836_v21 = vpop.f32.mrb[20].mxu0 }
 0x2d6   :  { %v1837_v22 = vpop.f32.mrb[21].mxu0 }
 0x2d7   :  { %v1097_v23 = vmax.f32 %v1085_v20, 0.0  ;;  %v1838_v24 = vadd.f32 %v1837_v22, %v1836_v21  ;;  %v1839_v25 = vpop.f32.mrb[22].mxu0  ;;  %v1100_v26 = vrot.slane %v1096_v19, 7  ;;  %v1112_v27 = vrot.slane %v1096_v19, 1 }
 0x2d8   :  { %v1840_v28 = vpop.f32.mrb[23].mxu0 }
 0x2d9   :  { %v1101_v29 = vrot.slane %v1097_v23, 7  ;;  %v1113_v30 = vrot.slane %v1097_v23, 1  ;;  %v1041_v31 = vadd.f32 %v1838_v24, %v1615_v7  ;;  %v1841_v32 = vadd.f32 %v1840_v28, %v1839_v25 }
 0x2da   :  { %v1126_v33 = vpack.c.bf16 %v1097_v23, %v1096_v19 }
 0x2db   :  { %v1106_v34 = vsel %vm89_vm1, %v1100_v26, %v1101_v29  ;;  %v1090_v35 = vadd.f32 %v1948_v5, %v1041_v31  ;;  %v1044_v36 = vadd.f32 %v1841_v32, %v1615_v7  ;;  %v1118_v37 = vsel %vm110_vm3, %v1112_v27, %v1113_v30 }
 0x2dc   :  { %1363 = vmatprep.mubr.bf16.mxu0 %v1126_v33 }
 0x2dd   :  { %v1098_v38 = vmax.f32 %v1090_v35, 0.0  ;;  %v1093_v39 = vadd.f32 %v1949_v11, %v1044_v36 }
 0x2df   :  { %v1102_v40 = vrot.slane %v1098_v38, 7  ;;  %v1114_v41 = vrot.slane %v1098_v38, 1  ;;  %v1099_v42 = vmax.f32 %v1093_v39, 0.0 }
 0x2e1   :  { %v1103_v43 = vrot.slane %v1099_v42, 7  ;;  %v1115_v44 = vrot.slane %v1099_v42, 1  ;;  %v1117_v45 = vsel %vm110_vm3, %v1113_v30, %v1114_v41  ;;  %v1127_v46 = vpack.c.bf16 %v1099_v42, %v1098_v38 }
 0x2e2   :  { %v1733_v47 = vpack.c.bf16 %v1117_v45, %v1118_v37  ;;  %v1105_v49 = vsel %vm89_vm1, %v1101_v29, %v1102_v40 }
 0x2e3   :  { %v1107_v50 = vsel %vm89_vm1, %v1103_v43, %v1100_v26  ;;  %v1116_v51 = vsel %vm110_vm3, %v1114_v41, %v1115_v44  ;;  %v1119_v52 = vsel %vm110_vm3, %v1115_v44, %v1112_v27  ;;  %v1104_v53 = vsel %vm89_vm1, %v1102_v40, %v1103_v43 }
 0x2e4   :  { %v1727_v55 = vpack.c.bf16 %v1106_v34, %v1107_v50  ;;  %1966 = vmatprep.mubr.msk.bf16.mxu1 %vm2214_vm9, %v1733_v47  ;;  %v1736_v56 = vpack.c.bf16 %v1119_v52, %v1116_v51  ;;  %v1730_v57 = vpack.c.bf16 %v1104_v53, %v1105_v49 }
 0x2e6   :  { %1728 = vmatmul.mubr.msk.bf16.vlgmr.msra.gmra.mrb[24].mxu0 %vm2196_vm7, %v1727_v55  ;;  %1967 = vmatmul.mubr.msk.bf16.vlgmr.msra.gmra.mrb[12].mxu1 %vm2228_vm11, %v1736_v56 }
 0x2e7   :  { %1371 = vmatprep.mubr.bf16.mxu0 %v1127_v46 }
 0x2ee   :  { %1731 = vmatmul.mubr.msk.bf16.gmra.mrb[28].mxu0 %vm2244_vm12, %v1730_v57 }
 0x3b9   :  { %v1868_v58 = vpop.f32.mrb[24].mxu0  ;;  %v1968_v60 = vpop.f32.mrb[12].mxu1 }
 0x3ba   :  { %v1869_v12 = vpop.f32.mrb[25].mxu0  ;;  %v1414_v61 = vpop.f32.mrb[13].mxu1 }
 0x3bb   :  { %v1870_v62 = vadd.f32 %v1869_v12, %v1868_v58  ;;  %v1871_v63 = vpop.f32.mrb[26].mxu0  ;;  %v1969_v0 = vpop.f32.mrb[14].mxu1 }
 0x3bc   :  { %v1872_v48 = vpop.f32.mrb[27].mxu0  ;;  %v1417_v1 = vpop.f32.mrb[15].mxu1 }
 0x3bd   :  { %v1366_v2 = vadd.f32 %v1870_v62, %v1701_v54  ;;  %v1873_v59 = vadd.f32 %v1872_v48, %v1871_v63 }
 0x3bf   :  { %v1415_v3 = vadd.f32 %v1414_v61, %v1366_v2  ;;  %v1369_v5 = vadd.f32 %v1873_v59, %v1701_v54 }
 0x3c1   :  { %1429 = vst.msk [vmem:[%s2583_s3] sm:$0xff] %vm19_vm0, %v1415_v3  ;;  %v1418_v4 = vadd.f32 %v1417_v1, %v1369_v5  ;;  %v1874_v6 = vpop.f32.mrb[28].mxu0 }
 0x3c2   :  { %v1875_v7 = vpop.f32.mrb[29].mxu0 }
 0x3c3   :  { %1430 = vst.msk [vmem:[%s2583_s3 + $0x8] sm:$0xff] %vm19_vm0, %v1418_v4  ;;  %v1876_v8 = vadd.f32 %v1875_v7, %v1874_v6  ;;  %v1877_v9 = vpop.f32.mrb[30].mxu0 }
 0x3c4   :  { %v1878_v10 = vpop.f32.mrb[31].mxu0 }
 0x3c5   :  { %v1374_v11 = vadd.f32 %v1876_v8, %v1701_v54  ;;  %v1879_v13 = vadd.f32 %v1878_v10, %v1877_v9 }
 0x3c7   :  { %v1423_v14 = vadd.f32 %v1968_v60, %v1374_v11  ;;  %v1377_v15 = vadd.f32 %v1879_v13, %v1701_v54 }
 0x3c9   :  { %1431 = vst.msk [vmem:[%s2583_s3 + $0x10] sm:$0xff] %vm19_vm0, %v1423_v14  ;;  %v1426_v16 = vadd.f32 %v1969_v0, %v1377_v15 }
 0x3cb   :  { %1432 = vst.msk [vmem:[%s2583_s3 + $0x18] sm:$0xff] %vm19_vm0, %v1426_v16 }

</bundles_post_ra>
